<compile_context>
chip_gen: v7x
topology: tpu7x:2x2x1
jax: 0.10.0
libtpu: 0.0.40
codegen_flags: <defaults>
</compile_context>

<pallas_src>
import functools

import jax
import jax.numpy as jnp
from jax.experimental import pallas as pl
from jax.experimental.pallas import tpu as pltpu

LANE = 128
SUBLANE = 8


def _round_up(x, m):
    return (x + m - 1) // m * m


# ---------------- fused kernel (feature-major: batch on lanes) ----------------

def _mlp_fused_kernel(*refs, n_hidden):
    # refs = (xT_ref, w1T, b1, ..., w_outT, b_out, oT_ref)
    xT_ref = refs[0]
    o_ref = refs[-1]
    wb = refs[1:-1]

    # TODO(synk): dropout (p=0.25) and the x + randn_like(x)*random_noise term
    # are train-time stochastic ops; with random_noise=0.0 and eval-mode
    # dropout both are identity, which is what this inference kernel does.
    h = xT_ref[...]                                       # (in_ch, tm) bf16
    for layer in range(n_hidden):                         # static unroll
        wT = wb[2 * layer][...]                           # (h_pad, prev_pad) bf16
        b = wb[2 * layer + 1][...]                        # (h_pad, 1)        f32
        acc = jnp.dot(wT, h, preferred_element_type=jnp.float32) + b
        h = jnp.maximum(acc, 0.0).astype(jnp.bfloat16)    # (h_pad, tm)

    w_o = wb[2 * n_hidden][...]                           # (o_pad, h_pad) bf16
    b_o = wb[2 * n_hidden + 1][...]                       # (o_pad, 1)     f32
    y = jnp.dot(w_o, h, preferred_element_type=jnp.float32) + b_o  # (o_pad, tm)

    # bgmm likelihood head (transposed): row 0 -> sigmoid, rows 1: -> exp.
    # sigmoid(y) = 0.5*(tanh(y/2)+1): numerically stable, single EUP tanh.
    row = jax.lax.broadcasted_iota(jnp.int32, y.shape, 0)
    sig = 0.5 * (jnp.tanh(0.5 * y) + 1.0)
    o_ref[...] = jnp.where(row == 0, sig, jnp.exp(y))


# ---------------- wrapper ----------------

def _choose_row_tile(b, row_tile):
    """Lane-tile for the batch axis: multiple of 128, divides the 128-aligned
    batch (no wasted near-full tail tile), and yields >=2 grid steps whenever
    possible so the parallel grid axis shards across both v7x TensorCores."""
    row_tile = min(1024, max(LANE, _round_up(row_tile, LANE)))
    b128 = _round_up(b, LANE)
    tm = LANE
    if b128 > LANE:
        for cand in (1024, 512, 256, 128):
            if cand <= row_tile and b128 % cand == 0 and b128 // cand >= 2:
                tm = cand
                break
    return tm


def mlp_forward(params, x, *, out_channels, row_tile=1024):
    b, in_ch = x.shape
    hidden = params["hidden"]            # list of (wT (h_pad, prev_pad) bf16, b (h_pad,1) f32)
    w_out_t, b_out = params["out"]       # (o_pad, h_last_pad) bf16, (o_pad, 1) f32
    n_hidden = len(hidden)
    o_pad = w_out_t.shape[0]

    tm = _choose_row_tile(b, row_tile)
    b_pad = _round_up(b, tm)

    # Feature-major input: (in_ch, b_pad) bf16, batch along lanes.  (In a real
    # pipeline the producer would emit this layout directly; here the wrapper
    # pays one tiny b*in_ch bf16 copy.)
    xT = jnp.transpose(x).astype(jnp.bfloat16)
    if b_pad != b:
        xT = jnp.pad(xT, ((0, 0), (0, b_pad - b)))

    flat_wb = []
    for wT, bias in hidden:
        flat_wb += [wT, bias]
    flat_wb += [w_out_t, b_out]

    in_specs = [pl.BlockSpec((in_ch, tm), lambda i: (0, i))]
    for arr in flat_wb:                  # full blocks, VMEM-resident across grid
        in_specs.append(pl.BlockSpec(arr.shape, lambda i: (0, 0)))
    out_spec = pl.BlockSpec((o_pad, tm), lambda i: (0, i))

    out = pl.pallas_call(
        functools.partial(_mlp_fused_kernel, n_hidden=n_hidden),
        grid=(b_pad // tm,),
        in_specs=in_specs,
        out_specs=out_spec,
        out_shape=jax.ShapeDtypeStruct((o_pad, b_pad), jnp.float32),
        compiler_params=pltpu.CompilerParams(
            dimension_semantics=("parallel",)),
    )(xT, *flat_wb)
    return out[:out_channels, :b].T      # (b, out_channels), f32


# ---------------- params (PyTorch nn.Linear-style init, transposed+padded) ----

def init_params(key, in_channels, hidden_channels, out_channels):
    n_layers = len(hidden_channels) + 1
    keys = jax.random.split(key, 2 * n_layers)

    def uniform(k, shape, fan_in):
        bound = 1.0 / float(fan_in) ** 0.5
        return jax.random.uniform(k, shape, jnp.float32, -bound, bound)

    hidden = []
    prev_true, prev_pad = in_channels, in_channels
    ki = 0
    for h in hidden_channels:
        h_pad = _round_up(h, SUBLANE)
        w = uniform(keys[ki], (h, prev_true), prev_true); ki += 1   # PyTorch (out, in)
        bb = uniform(keys[ki], (h,), prev_true); ki += 1
        w_p = jnp.zeros((h_pad, prev_pad), jnp.float32).at[:h, :prev_true].set(w)
        b_p = jnp.zeros((h_pad, 1), jnp.float32).at[:h, 0].set(bb)
        hidden.append((w_p.astype(jnp.bfloat16), b_p))
        prev_true, prev_pad = h, h_pad

    o_pad = _round_up(out_channels, SUBLANE)
    w = uniform(keys[ki], (out_channels, prev_true), prev_true); ki += 1
    bb = uniform(keys[ki], (out_channels,), prev_true)
    w_p = jnp.zeros((o_pad, prev_pad), jnp.float32)
    w_p = w_p.at[:out_channels, :prev_true].set(w)
    b_p = jnp.zeros((o_pad, 1), jnp.float32).at[:out_channels, 0].set(bb)
    return {"hidden": hidden, "out": (w_p.astype(jnp.bfloat16), b_p)}


# ---------------- pure-JAX f32 reference (correctness check) ----------------

def mlp_reference(params, x, out_channels):
    h = x.astype(jnp.float32)
    for wT, b in params["hidden"]:
        h = jnp.maximum(h @ wT.astype(jnp.float32).T + b[:, 0], 0.0)
    w_o, b_o = params["out"]
    y = (h @ w_o.astype(jnp.float32).T + b_o[:, 0])[:, :out_channels]
    return jnp.concatenate(
        [jax.nn.sigmoid(y[:, :1]), jnp.exp(y[:, 1:])], axis=1)


if __name__ == "__main__":
    B = 2
    IN_CH = 16
    HIDDEN = [10]        # MLP default hidden_channels
    OUT_CH = 3           # likelihood='bgmm' -> 3 output channels

    key = jax.random.PRNGKey(0)
    k_x, k_p = jax.random.split(key)
    x = jax.random.normal(k_x, (B, IN_CH), jnp.float32)
    params = init_params(k_p, IN_CH, HIDDEN, OUT_CH)

    fwd = jax.jit(functools.partial(mlp_forward, out_channels=OUT_CH))
    out = jax.block_until_ready(fwd(params, x))
    assert out.shape == (B, OUT_CH) and out.dtype == jnp.float32

    ref = mlp_reference(params, x, OUT_CH)
    # Tolerance covers bf16 operand quantization (f32 accumulation in-kernel).
    assert jnp.allclose(out, ref, rtol=5e-2, atol=5e-2)
    print("KERNEL_OK")
</pallas_src>

<mosaic_0001>
module attributes {stable_mosaic.version = 11 : i64} {
  func.func @_mlp_fused_kernel(%arg0: i32, %arg1: memref<16x128xbf16, #tpu.memory_space<vmem>>, %arg2: memref<16x16xbf16, #tpu.memory_space<vmem>>, %arg3: memref<16x1xf32, #tpu.memory_space<vmem>>, %arg4: memref<8x16xbf16, #tpu.memory_space<vmem>>, %arg5: memref<8x1xf32, #tpu.memory_space<vmem>>, %arg6: memref<8x128xf32, #tpu.memory_space<vmem>>) attributes {dimension_semantics = [#tpu.dimension_semantics<parallel>], iteration_bounds = array<i64: 1>, scalar_prefetch = 0 : i64, scratch_operands = 0 : i64, tpu.core_type = #tpu.core_type<tc>, window_params = [{transform_indices = @transform_0, window_bounds = array<i64: 16, 128>}, {pipeline_mode = #tpu.pipeline_mode<synchronous>, transform_indices = @transform_1, window_bounds = array<i64: 16, 16>}, {pipeline_mode = #tpu.pipeline_mode<synchronous>, transform_indices = @transform_2, window_bounds = array<i64: 16, 1>}, {pipeline_mode = #tpu.pipeline_mode<synchronous>, transform_indices = @transform_3, window_bounds = array<i64: 8, 16>}, {pipeline_mode = #tpu.pipeline_mode<synchronous>, transform_indices = @transform_4, window_bounds = array<i64: 8, 1>}, {transform_indices = @transform_5, window_bounds = array<i64: 8, 128>}]} {
    %c0 = arith.constant 0 : index
    %c0_0 = arith.constant 0 : index
    %0 = vector.load %arg1[%c0, %c0_0] : memref<16x128xbf16, #tpu.memory_space<vmem>>, vector<16x128xbf16>
    %c0_1 = arith.constant 0 : index
    %c0_2 = arith.constant 0 : index
    %1 = vector.load %arg2[%c0_1, %c0_2] : memref<16x16xbf16, #tpu.memory_space<vmem>>, vector<16x16xbf16>
    %c0_3 = arith.constant 0 : index
    %c0_4 = arith.constant 0 : index
    %2 = vector.load %arg3[%c0_3, %c0_4] : memref<16x1xf32, #tpu.memory_space<vmem>>, vector<16x1xf32>
    %cst = arith.constant dense<0.000000e+00> : vector<16x128xf32>
    %3 = tpu.matmul %1, %0, %cst {dimension_numbers = #tpu.dot_dimension_numbers<[1], [0], [0], [1], [0, 0, 1, 1], [], []>} : vector<16x16xbf16>, vector<16x128xbf16>, vector<16x128xf32> -> vector<16x128xf32>
    %4 = vector.broadcast %2 : vector<16x1xf32> to vector<16x128xf32>
    %5 = arith.addf %3, %4 : vector<16x128xf32>
    %cst_5 = arith.constant 0.000000e+00 : f32
    %6 = vector.broadcast %cst_5 : f32 to vector<16x128xf32>
    %7 = arith.maximumf %5, %6 : vector<16x128xf32>
    %8 = arith.truncf %7 : vector<16x128xf32> to vector<16x128xbf16>
    %c0_6 = arith.constant 0 : index
    %c0_7 = arith.constant 0 : index
    %9 = vector.load %arg4[%c0_6, %c0_7] : memref<8x16xbf16, #tpu.memory_space<vmem>>, vector<8x16xbf16>
    %c0_8 = arith.constant 0 : index
    %c0_9 = arith.constant 0 : index
    %10 = vector.load %arg5[%c0_8, %c0_9] : memref<8x1xf32, #tpu.memory_space<vmem>>, vector<8x1xf32>
    %cst_10 = arith.constant dense<0.000000e+00> : vector<8x128xf32>
    %11 = tpu.matmul %9, %8, %cst_10 {dimension_numbers = #tpu.dot_dimension_numbers<[1], [0], [0], [1], [0, 0, 1, 1], [], []>} : vector<8x16xbf16>, vector<16x128xbf16>, vector<8x128xf32> -> vector<8x128xf32>
    %12 = vector.broadcast %10 : vector<8x1xf32> to vector<8x128xf32>
    %13 = arith.addf %11, %12 : vector<8x128xf32>
    %14 = tpu.iota {dimensions = array<i32: 0>} : vector<8x128xi32>
    %cst_11 = arith.constant 5.000000e-01 : f32
    %15 = vector.broadcast %cst_11 : f32 to vector<8x128xf32>
    %16 = arith.mulf %15, %13 : vector<8x128xf32>
    %17 = math.tanh %16 : vector<8x128xf32>
    %cst_12 = arith.constant 1.000000e+00 : f32
    %18 = vector.broadcast %cst_12 : f32 to vector<8x128xf32>
    %19 = arith.addf %17, %18 : vector<8x128xf32>
    %cst_13 = arith.constant 5.000000e-01 : f32
    %20 = vector.broadcast %cst_13 : f32 to vector<8x128xf32>
    %21 = arith.mulf %20, %19 : vector<8x128xf32>
    %c0_i32 = arith.constant 0 : i32
    %22 = vector.broadcast %c0_i32 : i32 to vector<8x128xi32>
    %23 = arith.cmpi eq, %14, %22 : vector<8x128xi32>
    %24 = math.exp %13 : vector<8x128xf32>
    %25 = arith.select %23, %21, %24 : vector<8x128xi1>, vector<8x128xf32>
    %c0_14 = arith.constant 0 : index
    %c0_15 = arith.constant 0 : index
    %26 = vector.load %arg6[%c0_14, %c0_15] : memref<8x128xf32, #tpu.memory_space<vmem>>, vector<8x128xf32>
    tpu.vector_store %arg6[%c0_14, %c0_15], %25 {strides = array<i32>} : memref<8x128xf32, #tpu.memory_space<vmem>>, vector<8x128xf32>,
    return
  }
  func.func @transform_0(%arg0: i32) -> (i32, i32) {
    %c0_i32 = arith.constant 0 : i32
    %c0_i32_0 = arith.constant 0 : i32
    return %c0_i32, %arg0 : i32, i32
  }
  func.func @transform_1(%arg0: i32) -> (i32, i32) {
    %c0_i32 = arith.constant 0 : i32
    %c0_i32_0 = arith.constant 0 : i32
    %c0_i32_1 = arith.constant 0 : i32
    return %c0_i32, %c0_i32_0 : i32, i32
  }
  func.func @transform_2(%arg0: i32) -> (i32, i32) {
    %c0_i32 = arith.constant 0 : i32
    %c0_i32_0 = arith.constant 0 : i32
    %c0_i32_1 = arith.constant 0 : i32
    return %c0_i32, %c0_i32_0 : i32, i32
  }
  func.func @transform_3(%arg0: i32) -> (i32, i32) {
    %c0_i32 = arith.constant 0 : i32
    %c0_i32_0 = arith.constant 0 : i32
    %c0_i32_1 = arith.constant 0 : i32
    return %c0_i32, %c0_i32_0 : i32, i32
  }
  func.func @transform_4(%arg0: i32) -> (i32, i32) {
    %c0_i32 = arith.constant 0 : i32
    %c0_i32_0 = arith.constant 0 : i32
    %c0_i32_1 = arith.constant 0 : i32
    return %c0_i32, %c0_i32_0 : i32, i32
  }
  func.func @transform_5(%arg0: i32) -> (i32, i32) {
    %c0_i32 = arith.constant 0 : i32
    %c0_i32_0 = arith.constant 0 : i32
    return %c0_i32, %arg0 : i32, i32
  }
}

</mosaic_0001>

<bundles_post_ra>
// kernel: mlp_forward.1
= control target key start
LH: loop header
LB: loop body
LE: loop exit
PB: predicated region body
PF: predicated region fallthrough
CT: control target
= control target key end

     0   :  { %v192_v0 = vmov 0.0   ;;  %vm193_vm0 = vmmov 0   ;;  %v194_v3 = vmov 0   ;;  %vm48_vm1 = vcmask 130048   ;;  %s248_s0 = inlined_call_operand.vmem [shape: bf16[16,128], index: 0, kind: input, shape index: {}]   ;;  %s249_s1 = inlined_call_operand.vmem [shape: bf16[16,16], index: 1, kind: input, shape index: {}]   ;;  %s250_s2 = inlined_call_operand.vmem [shape: f32[16,1], index: 2, kind: input, shape index: {}]   ;;  %s251_s4 = inlined_call_operand.vmem [shape: f32[8,1], index: 4, kind: input, shape index: {}]   ;;  %s252_s3 = inlined_call_operand.vmem [shape: bf16[8,16], index: 3, kind: input, shape index: {}]   ;;  %s253_s5 = inlined_call_operand.vmem [shape: f32[8,128], index: 5, kind: output, shape index: {}]  }
   0x1   :  { %169 = vmatprep.subr.bf16.mxu0 %v192_v0  ;;  %v186_v1 = vld [vmem:[%s248_s0] sm:$0xff]   ;;  %171 = vmatprep.mubr.msk.bf16.mxu0 %vm193_vm0, %v192_v0  ;;  %v26_v5 = vld [vmem:[%s250_s2 + $0x8] sm:$0xff]  ;;  %v146_v27 = vlaneseq }
   0x2   :  { %v187_v2 = vld [vmem:[%s249_s1] sm:$0xff]   ;;  %184 = vset.pattern.permute.xlu0 %v194_v3  ;;  %175 = vmatprep.subr.bf16.mxu1 %v192_v0 }
   0x3   :  { %170 = vmatpush3.bf16.msra.mxu0 %v186_v1  ;;  %v25_v4 = vld [vmem:[%s250_s2] sm:$0xff]  ;;  %177 = vmatprep.mubr.msk.bf16.mxu1 %vm193_vm0, %v192_v0  ;;  %v147_v28 = vshrl.u32 %v146_v27, 7 }
   0x4   :  { %29 = vperm.xlu0 %184, %v25_v4   ;;  %185 = vset.pattern.permute.xlu1 %v194_v3  ;;  %v97_v6 = vld [vmem:[%s251_s4] sm:$0xff] }
   0x5   :  { %100 = vperm.xlu1 %185, %v97_v6   ;;  %v96_v18 = vld [vmem:[%s252_s3] sm:$0xf]  ;;  %vm152_vm2 = vcmp.eq.s32.totalorder %v147_v28, 0 }
   0x6   :  { %172 = vmatmul.mubr.msk.bf16.vlgmr.msra.gmra.mrb[0].mxu0 %vm48_vm1, %v187_v2 }
   0x8   :  { %34 = vperm.xlu0 %184, %v26_v5  }
  0x83   :  { %v30_v7 = vpop.permute.xlu0 %29 }
  0x84   :  { %v101_v19 = vpop.permute.xlu1 %100 }
  0x87   :  { %v35_v11 = vpop.permute.xlu0 %34 }
  0xd9   :  { %v86_v8 = vpop.f32.mrb[0].mxu0 }
  0xda   :  { %v87_v9 = vadd.f32 %v86_v8, %v30_v7  ;;  %v173_v10 = vpop.f32.mrb[1].mxu0 }
  0xdb   :  { %v89_v12 = vpop.f32.mrb[2].mxu0 }
  0xdc   :  { %v90_v13 = vadd.f32 %v89_v12, %v35_v11  ;;  %v174_v14 = vpop.f32.mrb[3].mxu0  ;;  %v93_v15 = vmax.f32 %v87_v9, 0.0 }
  0xde   :  { %v94_v16 = vmax.f32 %v90_v13, 0.0 }
  0xe0   :  { %v95_v17 = vpack.c.bf16 %v94_v16, %v93_v15 }
  0xe2   :  { %176 = vmatpush3.bf16.msra.mxu1 %v95_v17 }
  0xe5   :  { %178 = vmatmul.mubr.msk.bf16.vlgmr.msra.gmra.mrb[0].mxu1 %vm48_vm1, %v96_v18 }
 0x1b8   :  { %v140_v20 = vpop.f32.mrb[0].mxu1 }
 0x1b9   :  { %v141_v21 = vadd.f32 %v140_v20, %v101_v19  ;;  %v179_v22 = vpop.f32.mrb[1].mxu1 }
 0x1ba   :  { %v143_v23 = vpop.f32.mrb[2].mxu1 }
 0x1bb   :  { %v148_v24 = vmul.f32 0.5, %v141_v21  ;;  %v180_v25 = vpop.f32.mrb[3].mxu1  ;;  %v153_v26 = vmul.f32 1.442695, %v141_v21 }
 0x1bd   :  { %188 = vtanh.f32 %v148_v24 }
 0x1be   :  { %190 = vpow2.f32 %v153_v26 }
 0x1c7   :  { %v189_v29 = vpop.eup %188 }
 0x1c8   :  { %v150_v30 = vadd.f32 1.0, %v189_v29  ;;  %v191_v32 = vpop.eup %190 }
 0x1ca   :  { %v151_v31 = vmul.f32 0.5, %v150_v30 }
 0x1cc   :  { %v155_v33 = vsel %vm152_vm2, %v151_v31, %v191_v32 }
 0x1cd   :  { %156 = vst [vmem:[%s253_s5] sm:$0xff] %v155_v33 }

</bundles_post_ra>
